<compile_context>
chip_gen: v7x
topology: tpu7x:2x2x1
jax: 0.10.0
libtpu: 0.0.40
codegen_flags: <defaults>
</compile_context>

<pallas_src>
import functools

import jax
import jax.numpy as jnp
from jax import lax
from jax.experimental import pallas as pl
from jax.experimental.pallas import tpu as pltpu


# ---------------------------------------------------------------------------
# Kernel 1: hh^T = (lin2(relu(lin1(x))))^T, lane-dense, tiled over node columns
# ---------------------------------------------------------------------------
def _mlp_kernel(xT_ref, w1T_ref, b1_ref, w2T_ref, b2_ref, hhT_ref):
    # [H, F] @ [F, tile_n] -> [H, tile_n]   (lane dim = nodes)
    h = jnp.dot(w1T_ref[...], xT_ref[...],
                preferred_element_type=jnp.float32) + b1_ref[...]
    h = jnp.maximum(h, 0.0)                                    # ReLU
    # [C_pad, H] @ [H, tile_n] -> [C_pad, tile_n]
    hhT_ref[...] = jnp.dot(w2T_ref[...], h,
                           preferred_element_type=jnp.float32) + b2_ref[...]


# ---------------------------------------------------------------------------
# Kernel 2: K AirGNN AMP steps + log_softmax, adj^T streamed in (N, tile) blocks
# ---------------------------------------------------------------------------
def _prop_kernel(hh_ref, adj_ref, out_ref, xold_ref, xnew_ref, *,
                 n_classes, lam, coef, tile_n):
    k = pl.program_id(0)            # AMP step            (outer, sequential)
    j = pl.program_id(1)            # node-column tile     (inner, sequential)
    nk = pl.num_programs(0)
    nj = pl.num_programs(1)

    # One-time init: x_0 = hh = lin2(relu(lin1(x)))   (hh^T is fully resident)
    @pl.when(jnp.logical_and(k == 0, j == 0))
    def _():
        xold_ref[...] = hh_ref[...]

    col = pl.multiple_of(j * tile_n, tile_n)

    adj_blk = adj_ref[...]
    if adj_blk.dtype != jnp.float32:              # bf16-streamed adjacency
        adj_blk = adj_blk.astype(jnp.float32)

    # propagate: (adj @ x)^T == x^T @ adj^T    [C_pad, N] @ [N, tile_n]
    ax = jnp.dot(xold_ref[...], adj_blk, preferred_element_type=jnp.float32)

    xk = xold_ref[:, pl.ds(col, tile_n)]          # old state, this node tile
    hh = hh_ref[:, pl.ds(col, tile_n)]

    # y = x - gamma*2*(1-lambda)*(x - A x); coef == 1.0 algebraically -> fold
    if abs(coef - 1.0) < 1e-12:
        y = ax
    else:
        y = xk - coef * (xk - ax)

    # proximal_L21(y - hh, lam): per-node L2 norm over the class sublanes
    d = y - hh
    rn = jnp.sqrt(jnp.sum(d * d, axis=0, keepdims=True))       # [1, tile_n]
    rn_safe = jnp.maximum(rn, 1e-30)              # clamp before approx recip
    inv = pl.reciprocal(rn_safe, approx=True)     # EUP slot
    inv = inv * (2.0 - rn_safe * inv)             # one Newton step -> ~f32 exact
    scale = jnp.maximum(rn - lam, 0.0) * inv      # rn==0 -> score==0 -> scale==0
    x_new = hh + scale * d

    xnew_ref[:, pl.ds(col, tile_n)] = x_new

    # End of step k: commit the fully-updated state for step k+1.
    @pl.when(j == nj - 1)
    def _():
        xold_ref[...] = xnew_ref[...]

    # Last step: log_softmax over the real classes, lane-dense store.
    @pl.when(k == nk - 1)
    def _():
        logits = x_new                                         # [C_pad, tile_n]
        if n_classes == logits.shape[0]:
            m = jnp.max(logits, axis=0, keepdims=True)
            sh = logits - m
            lse = jnp.log(jnp.sum(jnp.exp(sh), axis=0, keepdims=True))
        else:                        # mask the zero-padded class rows
            cls = lax.broadcasted_iota(jnp.int32, logits.shape, 0)
            valid = cls < n_classes
            m = jnp.max(jnp.where(valid, logits, -1e30), axis=0, keepdims=True)
            sh = logits - m
            e = jnp.exp(jnp.where(valid, sh, -1e30))
            lse = jnp.log(jnp.sum(e, axis=0, keepdims=True))
        out_ref[...] = sh - lse


# ---------------------------------------------------------------------------
# Wrapper
# ---------------------------------------------------------------------------
def _pick_node_tile(n):
    for t in (512, 384, 256, 128):
        if t <= n and n % t == 0:
            return t
    return n          # fall back: whole node dim as a single (full-dim) tile


def airgnn_forward(x, adj, w1, b1, w2, b2, *, K, lambda_amp,
                   node_tile=None, adj_dtype=jnp.float32):
    N, F = x.shape
    H = w1.shape[1]
    C = w2.shape[1]
    assert adj.shape == (N, N)
    # TODO(synk): K <= 0 makes the propagation an identity in the original
    # module; this fused kernel assumes the usual K >= 1.
    assert K >= 1

    c_pad = max(8, ((C + 7) // 8) * 8)
    tn = int(node_tile) if node_tile is not None else _pick_node_tile(N)
    assert N % tn == 0 and (tn % 128 == 0 or tn == N), (N, tn)
    num_tiles = N // tn
    f32 = jnp.float32

    # Lane-dense (transposed) operands: nodes live on the 128-wide lane axis.
    xT = x.astype(f32).T                                          # [F, N]
    w1T = w1.astype(f32).T                                        # [H, F]
    b1c = b1.astype(f32).reshape(H, 1)                            # [H, 1]
    w2Tp = jnp.zeros((c_pad, H), f32).at[:C, :].set(w2.astype(f32).T)
    b2cp = jnp.zeros((c_pad, 1), f32).at[:C, :].set(b2.astype(f32).reshape(C, 1))
    # adj_t is symmetric after gcn_norm on undirected edges; transpose anyway
    # so x^T @ adj^T == (adj @ x)^T for arbitrary (directed) graphs.
    adjT = adj.T.astype(adj_dtype)                                # [N, N]

    # ---- kernel 1: hh^T, computed once ------------------------------------
    mlp_cost = pl.CostEstimate(
        flops=int(2 * N * F * H + 2 * N * H * c_pad),
        transcendentals=0,
        bytes_accessed=int(4 * (F * N + H * F + c_pad * H + 2 * c_pad * N)),
    )
    hhT = pl.pallas_call(
        _mlp_kernel,
        out_shape=jax.ShapeDtypeStruct((c_pad, N), f32),
        grid_spec=pltpu.PrefetchScalarGridSpec(
            num_scalar_prefetch=0,
            grid=(num_tiles,),
            in_specs=[
                pl.BlockSpec((F, tn), lambda i: (0, i)),
                pl.BlockSpec((H, F), lambda i: (0, 0)),
                pl.BlockSpec((H, 1), lambda i: (0, 0)),
                pl.BlockSpec((c_pad, H), lambda i: (0, 0)),
                pl.BlockSpec((c_pad, 1), lambda i: (0, 0)),
            ],
            out_specs=pl.BlockSpec((c_pad, tn), lambda i: (0, i)),
        ),
        compiler_params=pltpu.CompilerParams(
            dimension_semantics=("parallel",)),
        cost_estimate=mlp_cost,
    )(xT, w1T, b1c, w2Tp, b2cp)

    # ---- kernel 2: K AMP steps + log_softmax -------------------------------
    gamma = 1.0 / (2.0 * (1.0 - lambda_amp))
    coef = gamma * 2.0 * (1.0 - lambda_amp)        # == 1.0 algebraically
    lam = gamma * lambda_amp

    adj_itemsize = jnp.dtype(adj_dtype).itemsize
    vmem_est = (2 * N * tn * adj_itemsize          # double-buffered adj tile
                + 4 * 3 * c_pad * N                # hh^T + 2 state scratches
                + 4 * 2 * c_pad * tn)              # double-buffered out tile
    vmem_limit = int(min(max(2 * vmem_est, 16 * 2**20), 128 * 2**20))

    prop_cost = pl.CostEstimate(
        flops=int(2 * K * N * N * c_pad + 12 * K * N * c_pad),
        transcendentals=int(2 * K * N + c_pad * N),
        bytes_accessed=int(K * N * N * adj_itemsize + 4 * 3 * c_pad * N),
    )

    kernel = functools.partial(_prop_kernel, n_classes=C, lam=float(lam),
                               coef=float(coef), tile_n=tn)

    outT = pl.pallas_call(
        kernel,
        out_shape=jax.ShapeDtypeStruct((c_pad, N), f32),
        grid_spec=pltpu.PrefetchScalarGridSpec(
            num_scalar_prefetch=0,
            grid=(K, num_tiles),                   # K outer, node tiles inner
            in_specs=[
                pl.BlockSpec((c_pad, N), lambda k, j: (0, 0)),   # hh^T resident
                pl.BlockSpec((N, tn), lambda k, j: (0, j)),      # adj^T streamed
            ],
            out_specs=pl.BlockSpec((c_pad, tn), lambda k, j: (0, j)),
            scratch_shapes=[
                pltpu.VMEM((c_pad, N), f32),       # x_k     (read this step)
                pltpu.VMEM((c_pad, N), f32),       # x_{k+1} (written this step)
            ],
        ),
        compiler_params=pltpu.CompilerParams(
            # Both axes carry state through VMEM scratch -> sequential.
            # TODO(synk): a 'parallel' node-tile axis (v7x 2-TC sharding) would
            # need HBM-resident state instead of per-core VMEM scratch.
            dimension_semantics=("arbitrary", "arbitrary"),
            vmem_limit_bytes=vmem_limit),
        cost_estimate=prop_cost,
    )(hhT, adjT)

    # Drop class padding, return the module's natural [N, C] layout.
    return outT[:C, :].T


# ---------------------------------------------------------------------------
# Plain-JAX glue + reference
# ---------------------------------------------------------------------------
def gcn_norm_dense(edge_src, edge_dst, num_nodes):
    """Dense equivalent of gcn_norm(SparseTensor, add_self_loops=True)."""
    a = jnp.zeros((num_nodes, num_nodes), jnp.float32)
    a = a.at[edge_dst, edge_src].set(1.0)          # adj_t: row = dst, col = src
    diag = jnp.arange(num_nodes)
    a = a.at[diag, diag].set(1.0)                  # fill_diag(adj, 1.0)
    deg = jnp.sum(a, axis=1)
    dinv = jnp.where(deg > 0, 1.0 / jnp.sqrt(deg), 0.0)
    return a * dinv[:, None] * dinv[None, :]       # D^-1/2 A D^-1/2


def reference_forward(x, adj, w1, b1, w2, b2, *, K, lambda_amp):
    h = jnp.maximum(x @ w1 + b1, 0.0)
    z = h @ w2 + b2
    hh = z
    gamma = 1.0 / (2.0 * (1.0 - lambda_amp))
    coef = gamma * 2.0 * (1.0 - lambda_amp)
    lam = gamma * lambda_amp
    xk = z
    for _ in range(K):
        y = xk - coef * (xk - adj @ xk)
        d = y - hh
        rn = jnp.sqrt(jnp.sum(d * d, axis=1, keepdims=True))
        sc = jnp.maximum(rn - lam, 0.0)
        scale = jnp.where(rn > 0.0, sc / jnp.maximum(rn, 1e-30), sc)
        xk = hh + scale * d
    return jax.nn.log_softmax(xk, axis=1)


if __name__ == "__main__":
    # Small shapes consistent with the module: N nodes, nfeat -> nhid -> nclass.
    N, NFEAT, NHID, NCLASS = 256, 64, 64, 8
    K, ALPHA, LAMBDA_AMP = 4, 0.1, 0.5          # ALPHA unused in AirGNN mode

    key = jax.random.PRNGKey(0)
    kx, ke, kw1, kb1, kw2, kb2 = jax.random.split(key, 6)

    # Node features.
    x = jax.random.normal(kx, (N, NFEAT), jnp.float32)

    # Random symmetric edge_index, then GCN normalization with self-loops.
    n_edges = 4 * N
    src = jax.random.randint(ke, (n_edges,), 0, N)
    dst = jnp.roll(src, 1)
    edge_src = jnp.concatenate([src, dst])
    edge_dst = jnp.concatenate([dst, src])
    adj = gcn_norm_dense(edge_src, edge_dst, N)

    # Deterministic Linear parameters (PyTorch-style uniform bounds), stored
    # as [in, out] so the model computes x @ W + b.
    bound1 = 1.0 / float(jnp.sqrt(jnp.float32(NFEAT)))
    w1 = jax.random.uniform(kw1, (NFEAT, NHID), jnp.float32, -bound1, bound1)
    b1 = jax.random.uniform(kb1, (NHID,), jnp.float32, -bound1, bound1)
    bound2 = 1.0 / float(jnp.sqrt(jnp.float32(NHID)))
    w2 = jax.random.uniform(kw2, (NHID, NCLASS), jnp.float32, -bound2, bound2)
    b2 = jax.random.uniform(kb2, (NCLASS,), jnp.float32, -bound2, bound2)

    out = airgnn_forward(x, adj, w1, b1, w2, b2, K=K, lambda_amp=LAMBDA_AMP,
                         node_tile=128)   # 2 node tiles -> exercises pipelining
    out = jax.block_until_ready(out)

    ref = reference_forward(x, adj, w1, b1, w2, b2, K=K, lambda_amp=LAMBDA_AMP)
    assert out.shape == (N, NCLASS)
    assert bool(jnp.all(jnp.isfinite(out)))
    assert bool(jnp.allclose(out, ref, atol=2e-3, rtol=2e-3)), float(
        jnp.max(jnp.abs(out - ref)))

    print("KERNEL_OK")
</pallas_src>

<mosaic_0001>
module attributes {stable_mosaic.version = 11 : i64} {
  func.func @_mlp_kernel(%arg0: i32, %arg1: memref<64x128xf32, #tpu.memory_space<vmem>>, %arg2: memref<64x64xf32, #tpu.memory_space<vmem>>, %arg3: memref<64x1xf32, #tpu.memory_space<vmem>>, %arg4: memref<8x64xf32, #tpu.memory_space<vmem>>, %arg5: memref<8x1xf32, #tpu.memory_space<vmem>>, %arg6: memref<8x128xf32, #tpu.memory_space<vmem>>) attributes {dimension_semantics = [#tpu.dimension_semantics<parallel>], iteration_bounds = array<i64: 2>, scalar_prefetch = 0 : i64, scratch_operands = 0 : i64, tpu.core_type = #tpu.core_type<tc>, window_params = [{transform_indices = @transform_0, window_bounds = array<i64: 64, 128>}, {pipeline_mode = #tpu.pipeline_mode<synchronous>, transform_indices = @transform_1, window_bounds = array<i64: 64, 64>}, {pipeline_mode = #tpu.pipeline_mode<synchronous>, transform_indices = @transform_2, window_bounds = array<i64: 64, 1>}, {pipeline_mode = #tpu.pipeline_mode<synchronous>, transform_indices = @transform_3, window_bounds = array<i64: 8, 64>}, {pipeline_mode = #tpu.pipeline_mode<synchronous>, transform_indices = @transform_4, window_bounds = array<i64: 8, 1>}, {transform_indices = @transform_5, window_bounds = array<i64: 8, 128>}]} {
    %c0 = arith.constant 0 : index
    %c0_0 = arith.constant 0 : index
    %0 = vector.load %arg2[%c0, %c0_0] : memref<64x64xf32, #tpu.memory_space<vmem>>, vector<64x64xf32>
    %c0_1 = arith.constant 0 : index
    %c0_2 = arith.constant 0 : index
    %1 = vector.load %arg1[%c0_1, %c0_2] : memref<64x128xf32, #tpu.memory_space<vmem>>, vector<64x128xf32>
    %cst = arith.constant dense<0.000000e+00> : vector<64x128xf32>
    %2 = tpu.matmul %0, %1, %cst {dimension_numbers = #tpu.dot_dimension_numbers<[1], [0], [0], [1], [0, 0, 1, 1], [], []>} : vector<64x64xf32>, vector<64x128xf32>, vector<64x128xf32> -> vector<64x128xf32>
    %c0_3 = arith.constant 0 : index
    %c0_4 = arith.constant 0 : index
    %3 = vector.load %arg3[%c0_3, %c0_4] : memref<64x1xf32, #tpu.memory_space<vmem>>, vector<64x1xf32>
    %4 = vector.broadcast %3 : vector<64x1xf32> to vector<64x128xf32>
    %5 = arith.addf %2, %4 : vector<64x128xf32>
    %cst_5 = arith.constant 0.000000e+00 : f32
    %6 = vector.broadcast %cst_5 : f32 to vector<64x128xf32>
    %7 = arith.maximumf %5, %6 : vector<64x128xf32>
    %c0_6 = arith.constant 0 : index
    %c0_7 = arith.constant 0 : index
    %8 = vector.load %arg4[%c0_6, %c0_7] : memref<8x64xf32, #tpu.memory_space<vmem>>, vector<8x64xf32>
    %cst_8 = arith.constant dense<0.000000e+00> : vector<8x128xf32>
    %9 = tpu.matmul %8, %7, %cst_8 {dimension_numbers = #tpu.dot_dimension_numbers<[1], [0], [0], [1], [0, 0, 1, 1], [], []>} : vector<8x64xf32>, vector<64x128xf32>, vector<8x128xf32> -> vector<8x128xf32>
    %c0_9 = arith.constant 0 : index
    %c0_10 = arith.constant 0 : index
    %10 = vector.load %arg5[%c0_9, %c0_10] : memref<8x1xf32, #tpu.memory_space<vmem>>, vector<8x1xf32>
    %11 = vector.broadcast %10 : vector<8x1xf32> to vector<8x128xf32>
    %12 = arith.addf %9, %11 : vector<8x128xf32>
    %c0_11 = arith.constant 0 : index
    %c0_12 = arith.constant 0 : index
    %13 = vector.load %arg6[%c0_11, %c0_12] : memref<8x128xf32, #tpu.memory_space<vmem>>, vector<8x128xf32>
    tpu.vector_store %arg6[%c0_11, %c0_12], %12 {strides = array<i32>} : memref<8x128xf32, #tpu.memory_space<vmem>>, vector<8x128xf32>,
    return
  }
  func.func @transform_0(%arg0: i32) -> (i32, i32) {
    %c0_i32 = arith.constant 0 : i32
    %c0_i32_0 = arith.constant 0 : i32
    return %c0_i32, %arg0 : i32, i32
  }
  func.func @transform_1(%arg0: i32) -> (i32, i32) {
    %c0_i32 = arith.constant 0 : i32
    %c0_i32_0 = arith.constant 0 : i32
    %c0_i32_1 = arith.constant 0 : i32
    return %c0_i32, %c0_i32_0 : i32, i32
  }
  func.func @transform_2(%arg0: i32) -> (i32, i32) {
    %c0_i32 = arith.constant 0 : i32
    %c0_i32_0 = arith.constant 0 : i32
    %c0_i32_1 = arith.constant 0 : i32
    return %c0_i32, %c0_i32_0 : i32, i32
  }
  func.func @transform_3(%arg0: i32) -> (i32, i32) {
    %c0_i32 = arith.constant 0 : i32
    %c0_i32_0 = arith.constant 0 : i32
    %c0_i32_1 = arith.constant 0 : i32
    return %c0_i32, %c0_i32_0 : i32, i32
  }
  func.func @transform_4(%arg0: i32) -> (i32, i32) {
    %c0_i32 = arith.constant 0 : i32
    %c0_i32_0 = arith.constant 0 : i32
    %c0_i32_1 = arith.constant 0 : i32
    return %c0_i32, %c0_i32_0 : i32, i32
  }
  func.func @transform_5(%arg0: i32) -> (i32, i32) {
    %c0_i32 = arith.constant 0 : i32
    %c0_i32_0 = arith.constant 0 : i32
    return %c0_i32, %arg0 : i32, i32
  }
}

</mosaic_0001>

<bundles_post_ra>
// kernel: tpu_custom_call.1
= control target key start
LH: loop header
LB: loop body
LE: loop exit
PB: predicated region body
PF: predicated region fallthrough
CT: control target
= control target key end

     0   :  { %10 = vsyncpa [#allocation3], 0  ;;  %s1148_s0 = inlined_call_operand.hbm [shape: f32[64,256], index: 0, kind: input, shape index: {}]   ;;  %s1149_s1 = inlined_call_operand.vmem [shape: f32[64,64], index: 1, kind: input, shape index: {}]   ;;  %s1150_s2 = inlined_call_operand.vmem [shape: f32[64,1], index: 2, kind: input, shape index: {}]   ;;  %s1151_s3 = inlined_call_operand.vmem [shape: f32[8,64], index: 3, kind: input, shape index: {}]   ;;  %s1152_s4 = inlined_call_operand.vmem [shape: f32[8,1], index: 4, kind: input, shape index: {}]   ;;  %s1153_s5 = inlined_call_operand.hbm [shape: f32[8,256], index: 5, kind: output, shape index: {}]  }
   0x1   :  { %12 = vsyncpa [#allocation3 + $0x1], 0 }
   0x2   :  { %13 = vsyncpa [#allocation4], 0 }
   0x3   :  { %15 = vsyncpa [#allocation4 + $0x1], 0  ;;  %s922_s18 = smov 0   ;;  %s924_s19 = smov 0  }
   0x4   :  { %s926_s20 = smov 0   ;;  %s928_s21 = smov 0  }
   0x5 LB: > { %s943_s22 = sadd.s32 4294967295, %s881_s21   ;;  %s609_s23 = sadd.s32 4294967294, %s881_s21   ;;  %s881_s21 = sphi %s928_s21, %s1167_s21   ;;  %s877_s20 = sphi %s926_s20, %s1166_s20   ;;  %s873_s19 = sphi %s924_s19, %s1165_s19   ;;  %s869_s18 = sphi %s922_s18, %s1164_s18  }
   0x6   : > { %s947_s24 = sadd.s32 1, %s881_s21   ;;  %s28_s25 = sadd.s32 1, %s877_s20 }
   0x7   : > { %s25_s26 = ssub.s32 %s881_s21, %s947_s24  ;;  %p35_p0 = scmp.ne.s32.totalorder %s877_s20, %s873_s19 }
   0x8   : > { %p26_p1 = scmp.eq.s32.totalorder %s25_s26, 0  ;;  %p36_p2 = scmp.eq.s32.totalorder %s881_s21, 0 }
   0x9   : > { %p41_p3 = scmp.ne.s32.totalorder %s873_s19, %s869_s18  ;;  %p42_p4 = scmp.eq.s32.totalorder %s943_s22, 0 }
   0xa   : > { %s959_s27 = scalar_select %p26_p1, %s877_s20, %s28_s25  }
   0xb   : > { %p961_p5 = por %p36_p2, %p35_p0  ;;  %p965_p6 = por %p42_p4, %p41_p3 }
   0xc   : > { %p149_p7 = scmp.eq.s32.totalorder %s943_s22, 1  ;;  %p155_p8 = scmp.eq.s32.totalorder %s609_s23, 1 }
   0xd   : > { %p742_p10 = scmp.lt.s32.totalorder %s881_s21, 2  ;;  %s187_s7 = sand.u32 1, %s877_s20  }
   0xe   : > { %p972_p11 = por %p149_p7, %p35_p0  ;;  %p976_p12 = por %p155_p8, %p41_p3 }
   0xf   : > { %s613_s8 = sshll.u32 %s881_s21, 7  ;;  %s612_s9 = sshll.u32 %s187_s7, 6 }
  0x10   : > { %s1157_s30 = scalar_select %p972_p11, 1, 0 }
  0x11   : > { %s1158_s6 = scalar_select %p976_p12, 1, 0 }
  0x12   : > { %s985_s12 = scalar_lea.hbm %s1148_s0, %s613_s8  ;;  %s191_s13 = scalar_lea.vmem [#allocation2], %s612_s9 }
  0x13   : > { %s197_s14 = sshll.u32 %s191_s13, 4  ;;  %p989_p13 = pnand %p742_p10, %p961_p5  ;;  %s993_s14 = int_to_ptr.vmem [resolvable:$true] %s197_s14 }
  0x14   : > { %s996_s16 = scalar_lea.sflag [#allocation3], %s187_s7  ;;  %s785_s17 = scalar_lea.hbm %s985_s12, 1024 }
  0x15   : > { %p786_p1 = scmp.ne.s32.totalorder %s985_s12, %s785_s17  ;;  %p787_p2 = pneg %p989_p13 }
  0x16   : > { %s790_s26 = scalar_lea.hbm %s1148_s0, 2048  ;;  %p791_p5 = scmp.lt.u32.totalorder %s985_s12, %s1148_s0 }
  0x17   : > { %p788_p3 = pnand %p787_p2, %p786_p1  ;;  %p792_p7 = scmp.lt.u32.totalorder %s790_s26, %s785_s17 }
  0x18   : > { %p794_p10 = scmp.lt.u32.totalorder %s785_s17, %s985_s12 }
  0x19   : > { %p789_p4 = pneg %p788_p3  ;;  %p793_p8 = por %p792_p7, %p791_p5 }
  0x1b   : > { %p795_p9 = por %p794_p10, %p793_p8 }
  0x1d   : > { %p796_p0 = pnand %p795_p9, %p789_p4 }
  0x1f   : > { %799 = shalt.err (!%p796_p0)
}
  0x20   : > { %s800_s7 = scalar_lea.vmem %s993_s14, 1024  ;;  %s883_s9 = smov [#allocation2]  }
  0x21   : > { %p801_p1 = scmp.ne.s32.totalorder %s993_s14, %s800_s7  ;;  %s805_s10 = sshll.u32 %s883_s9, 4  ;;  %s806_s10 = int_to_ptr.vmem [resolvable:$false] %s805_s10 }
  0x22   : > { %s807_s11 = scalar_lea.vmem %s806_s10, 2048  ;;  %p808_p11 = scmp.lt.s32.totalorder %s993_s14, %s806_s10 }
  0x23   : > { %p803_p3 = pnand %p801_p1, %p787_p2  ;;  %p809_p5 = scmp.lt.s32.totalorder %s807_s11, %s800_s7 }
  0x25   : > { %p804_p12 = pneg %p803_p3  ;;  %p810_p7 = por %p809_p5, %p808_p11 }
  0x27   : > { %p811_p8 = pnand %p810_p7, %p804_p12 }
  0x29   : > { %814 = shalt.err (!%p811_p8)
}
  0x2a   : > { %s884_s13 = smov 256   ;;  %s885_s17 = smov 128  }
  0x2b   : > { %s886_s23 = smov 8   ;;  %p205_p9 = scmp.lt.s32.totalorder %s881_s21, 3 }
  0x2c   : > { %737 = dma.hbm_to_vmem [thread:$0]  (!%p989_p13), %s985_s12, 1024, %s993_s14, %s996_s16, %s884_s13, %s885_s17, %s886_s23  }
  0x2d   : > { %p1160_p0 = scmp.ge.s32.totalorder %s881_s21, 1 }
  0x2f   : > { %p206_p2 = pnand %p1160_p0, %p205_p9 }
  0x30   : > { %s1028_s25 = sand.u32 (!%p206_p2), 1, %s873_s19  }
  0x31   : > { %209 = sbr.rel (%p206_p2) target bundleno = 538 (0x21a), region = 40  ;;  %s615_s26 = sshll.u32 (!%p206_p2), %s1028_s25, 6 }
  0x32   : > { %s212_s28 = scalar_lea.sflag (!%p206_p2), [#allocation3], %s1028_s25  ;;  %s215_s8 = scalar_lea.vmem (!%p206_p2), [#allocation2], %s615_s26 }
  0x38   : > { %860 = dma.done.wait (%p965_p6), %s212_s28, 1024  }
  0x39   : > { %862 = vsyncadd (%p965_p6), %s212_s28, 4294966272  ;;  %v887_v0 = vmov 0   ;;  %v250_v1 = vld [vmem:[%s215_s8] sm:$0xff]  ;;  %v251_v2 = vld [vmem:[%s215_s8 + $0x8] sm:$0xff]  ;;  %vm306_vm0 = vcmask 523264   ;;  %v888_v30 = vmov 0.0|0.0  }
  0x3a   : > { %783 = vset.pattern.permute.xlu0 %v887_v0  ;;  %784 = vset.pattern.permute.xlu1 %v887_v0  ;;  %v252_v3 = vld [vmem:[%s215_s8 + $0x10] sm:$0xff]  ;;  %v702_v4 = vpack.c.bf16 %v251_v2, %v250_v1  ;;  %v253_v5 = vld [vmem:[%s215_s8 + $0x18] sm:$0xff]  ;;  %v254_v7 = vld [vmem:[%s215_s8 + $0x20] sm:$0xff]  ;;  %vm889_vm1 = vmmov 0   ;;  %v890_v31 = vmov 0.0   ;;  %s616_s9 = sshll.u32 %s1028_s25, 3 }
  0x3b   : > { %v706_v6 = vpack.c.bf16 %v253_v5, %v252_v3  ;;  %v255_v8 = vld [vmem:[%s215_s8 + $0x28] sm:$0xff]  ;;  %v242_v9 = vld [vmem:[%s1149_s1] sm:$0xff]  ;;  %v256_v12 = vld [vmem:[%s215_s8 + $0x30] sm:$0xff]  ;;  %718 = vmatprep.subr.bf16.mxu1 %v888_v30  ;;  %699 = vmatprep.mubr.msk.f32.mxu1 %vm889_vm1, %v890_v31  ;;  %s627_s10 = sshll.u32 %s943_s22, 7  ;;  %s241_s11 = scalar_lea.vmem [#allocation5], %s616_s9 }
  0x3c   : > { %703 = vmatprep.subr.bf16.mxu0 %v702_v4  ;;  %671 = vmatprep.mubr.msk.f32.mxu0 %vm306_vm0, %v242_v9  ;;  %v710_v10 = vpack.c.bf16 %v255_v8, %v254_v7  ;;  %v258_v11 = vld [vmem:[%s1150_s2] sm:$0xff]  ;;  %v257_v13 = vld [vmem:[%s215_s8 + $0x38] sm:$0xff]  ;;  %v260_v14 = vld [vmem:[%s1150_s2 + $0x10] sm:$0xff]  ;;  %s539_s13 = sshll.u32 %s241_s11, 4  ;;  %s1104_s26 = scalar_lea.hbm %s1153_s5, %s627_s10  ;;  %s1106_s13 = int_to_ptr.vmem [resolvable:$true] %s539_s13 }
  0x3d   : > { %705 = vmatpush3.bf16.msra.mxu0 %v702_v4  ;;  %268 = vperm.xlu0 %783, %v258_v11   ;;  %v259_v15 = vld [vmem:[%s1150_s2 + $0x8] sm:$0xff]  ;;  %v261_v16 = vld [vmem:[%s1150_s2 + $0x18] sm:$0xff]  ;;  %v714_v17 = vpack.c.bf16 %v257_v13, %v256_v12  ;;  %v262_v18 = vld [vmem:[%s1150_s2 + $0x20] sm:$0xff]  ;;  %s526_s28 = scalar_lea.sflag [#allocation4], %s1028_s25  ;;  %s815_s8 = scalar_lea.vmem %s1106_s13, 128 }
  0x3e   : > { %707 = vmatprep.subr.bf16.mxu0 %v706_v6  ;;  %278 = vperm.xlu1 %784, %v260_v14   ;;  %v263_v19 = vld [vmem:[%s1150_s2 + $0x28] sm:$0xff]  ;;  %v264_v20 = vld [vmem:[%s1150_s2 + $0x30] sm:$0xff]  ;;  %v265_v22 = vld [vmem:[%s1150_s2 + $0x38] sm:$0xff]  ;;  %p816_p6 = scmp.ne.s32.totalorder %s1106_s13, %s815_s8  ;;  %p1161_p11 = scmp.ne.s32.totalorder %s1157_s30, 0 }
  0x3f   : > { %v243_v21 = vld [vmem:[%s1149_s1 + $0x8] sm:$0xff]  ;;  %v244_v23 = vld [vmem:[%s1149_s1 + $0x10] sm:$0xff]  ;;  %v445_v24 = vld [vmem:[%s1152_s4] sm:$0xff]  ;;  %s891_s22 = smov [#allocation5]  }
  0x40   : > { %v245_v25 = vld [vmem:[%s1149_s1 + $0x18] sm:$0xff]  ;;  %v246_v26 = vld [vmem:[%s1149_s1 + $0x20] sm:$0xff]  ;;  %v247_v27 = vld [vmem:[%s1149_s1 + $0x28] sm:$0xff]  ;;  %p817_p12 = pnand %p816_p6, %p1161_p11  ;;  %s819_s12 = sshll.u32 %s891_s22, 4  ;;  %s820_s12 = int_to_ptr.vmem [resolvable:$false] %s819_s12 }
  0x41   : > { %709 = vmatpush3.bf16.msra.mxu0 %v706_v6  ;;  %273 = vperm.xlu0 %783, %v259_v15   ;;  %v248_v28 = vld [vmem:[%s1149_s1 + $0x30] sm:$0xff]  ;;  %v249_v29 = vld [vmem:[%s1149_s1 + $0x38] sm:$0xff]  ;;  %v444_v4 = vld [vmem:[%s1151_s3] sm:$0xff]  ;;  %s821_s14 = scalar_lea.vmem %s820_s12, 256  ;;  %p822_p4 = scmp.lt.s32.totalorder %s1106_s13, %s820_s12 }
  0x42   : > { %711 = vmatprep.subr.bf16.mxu0 %v710_v10  ;;  %283 = vperm.xlu1 %784, %v261_v16   ;;  %p818_p13 = pneg %p817_p12  ;;  %p823_p10 = scmp.lt.s32.totalorder %s821_s14, %s815_s8 }
  0x44   : > { %p824_p1 = por %p823_p10, %p822_p4 }
  0x45   : > { %713 = vmatpush3.bf16.msra.mxu0 %v710_v10  ;;  %288 = vperm.xlu0 %783, %v262_v18  }
  0x46   : > { %715 = vmatprep.subr.bf16.mxu0 %v714_v17  ;;  %293 = vperm.xlu1 %784, %v263_v19   ;;  %p825_p3 = pnand %p824_p1, %p818_p13 }
  0x49   : > { %717 = vmatpush3.bf16.msra.mxu0 %v714_v17  ;;  %298 = vperm.xlu0 %783, %v264_v20  }
  0x4a   : > { %303 = vperm.xlu1 %784, %v265_v22  }
  0x4c   : > { %672 = vmatmul.mubr.msk.f32.vlgmr.msra.gmra.mrb[0].mxu0 %vm306_vm0, %v243_v21 }
  0x4d   : > { %674 = vmatprep.mubr.msk.f32.mxu0 %vm306_vm0, %v244_v23  ;;  %448 = vperm.xlu0 %783, %v445_v24  }
  0x50   : > { %675 = vmatmul.mubr.msk.f32.gmra.mrb[2].mxu0 %vm306_vm0, %v245_v25 }
  0x51   : > { %677 = vmatprep.mubr.msk.f32.mxu0 %vm306_vm0, %v246_v26 }
  0x54   : > { %678 = vmatmul.mubr.msk.f32.gmra.mrb[4].mxu0 %vm306_vm0, %v247_v27 }
  0x55   : > { %680 = vmatprep.mubr.msk.f32.mxu0 %vm306_vm0, %v248_v28 }
  0x58   : > { %681 = vmatmul.mubr.msk.f32.gmra.mrb[6].mxu0 %vm306_vm0, %v249_v29 }
  0xbc   : > { %v269_v32 = vpop.permute.xlu0 %268 }
  0xbd   : > { %v279_v33 = vpop.permute.xlu1 %278 }
  0xc0   : > { %v274_v34 = vpop.permute.xlu0 %273 }
  0xc1   : > { %v284_v35 = vpop.permute.xlu1 %283 }
  0xc4   : > { %v289_v48 = vpop.permute.xlu0 %288 }
  0xc5   : > { %v294_v45 = vpop.permute.xlu1 %293 }
  0xc8   : > { %v299_v60 = vpop.permute.xlu0 %298 }
  0xc9   : > { %v304_v57 = vpop.permute.xlu1 %303 }
  0xcc   : > { %v449_v5 = vpop.permute.xlu0 %448 }
 0x11f   : > { %v673_v36 = vpop.f32.mrb[0].mxu0 }
 0x120   : > { %v403_v37 = vadd.f32 %v673_v36, %v274_v34  ;;  %v397_v38 = vpop.f32.mrb[1].mxu0 }
 0x121   : > { %v398_v39 = vadd.f32 %v397_v38, %v269_v32 }
 0x122   : > { %v437_v40 = vmax.f32 %v403_v37, 0.0 }
 0x123   : > { %v436_v41 = vmax.f32 %v398_v39, 0.0  ;;  %v676_v42 = vpop.f32.mrb[2].mxu0 }
 0x124   : > { %v413_v43 = vadd.f32 %v676_v42, %v284_v35  ;;  %v407_v44 = vpop.f32.mrb[3].mxu0 }
 0x125   : > { %v408_v46 = vadd.f32 %v407_v44, %v279_v33  ;;  %v719_v47 = vpack.c.bf16 %v437_v40, %v436_v41 }
 0x126   : > { %v439_v49 = vmax.f32 %v413_v43, 0.0 }
 0x127   : > { %v438_v50 = vmax.f32 %v408_v46, 0.0  ;;  %v679_v51 = vpop.f32.mrb[4].mxu0  ;;  %720 = vmatpush3.bf16.msra.mxu1 %v719_v47 }
 0x128   : > { %v423_v52 = vadd.f32 %v679_v51, %v294_v45  ;;  %v417_v53 = vpop.f32.mrb[5].mxu0  ;;  %721 = vmatprep.subr.bf16.mxu1 %v888_v30 }
 0x129   : > { %v722_v54 = vpack.c.bf16 %v439_v49, %v438_v50  ;;  %v418_v55 = vadd.f32 %v417_v53, %v289_v48 }
 0x12a   : > { %v441_v56 = vmax.f32 %v423_v52, 0.0 }
 0x12b   : > { %v440_v58 = vmax.f32 %v418_v55, 0.0  ;;  %v682_v59 = vpop.f32.mrb[6].mxu0  ;;  %723 = vmatpush3.bf16.msra.mxu1 %v722_v54 }
 0x12c   : > { %v433_v61 = vadd.f32 %v682_v59, %v304_v57  ;;  %v427_v62 = vpop.f32.mrb[7].mxu0  ;;  %724 = vmatprep.subr.bf16.mxu1 %v888_v30 }
 0x12d   : > { %v725_v63 = vpack.c.bf16 %v441_v56, %v440_v58  ;;  %v428_v0 = vadd.f32 %v427_v62, %v299_v60 }
 0x12e   : > { %v443_v1 = vmax.f32 %v433_v61, 0.0 }
 0x12f   : > { %v442_v2 = vmax.f32 %v428_v0, 0.0  ;;  %726 = vmatpush3.bf16.msra.mxu1 %v725_v63 }
 0x130   : > { %727 = vmatprep.subr.bf16.mxu1 %v888_v30 }
 0x131   : > { %v728_v3 = vpack.c.bf16 %v443_v1, %v442_v2 }
 0x133   : > { %729 = vmatpush3.bf16.msra.mxu1 %v728_v3 }
 0x136   : > { %700 = vmatmul.mubr.msk.f32.vlgmr.msra.gmra.mrb[0].mxu1 %vm306_vm0, %v444_v4 }
 0x209   : > { %v520_v6 = vpop.f32.mrb[0].mxu1 }
 0x20a   : > { %v521_v7 = vadd.f32 %v520_v6, %v449_v5  ;;  %v701_v8 = vpop.f32.mrb[1].mxu1 }
 0x20c   : > { %524 = vst [vmem:[%s241_s11] sm:$0xff] %v521_v7 }
 0x20d   : > { %828 = shalt.err (!%p825_p3)
}
 0x20e   : > { %s829_s25 = scalar_lea.hbm %s1104_s26, 128  ;;  %s833_s16 = scalar_lea.hbm %s1153_s5, 256 }
 0x20f   : > { %p830_p5 = scmp.ne.s32.totalorder %s1104_s26, %s829_s25  ;;  %p834_p9 = scmp.lt.u32.totalorder %s1104_s26, %s1153_s5 }
 0x210   : > { %p835_p0 = scmp.lt.u32.totalorder %s833_s16, %s829_s25  ;;  %p837_p6 = scmp.lt.u32.totalorder %s829_s25, %s1104_s26 }
 0x211   : > { %p831_p7 = pnand %p830_p5, %p1161_p11 }
 0x212   : > { %p836_p2 = por %p835_p0, %p834_p9 }
 0x213   : > { %p832_p8 = pneg %p831_p7 }
 0x214   : > { %p838_p12 = por %p837_p6, %p836_p2 }
 0x216   : > { %p839_p13 = pnand %p838_p12, %p832_p8 }
 0x218   : > { %842 = shalt.err (!%p839_p13)
}
 0x219   : > { %732 = dma.vmem_to_hbm [thread:$0]  (%p1161_p11), %s1106_s13, 128, %s1104_s26, %s526_s28  }
 0x21a PF: > { %s551_s10 = sand.u32 1, %s869_s18   ;;  %p1162_p4 = scmp.ne.s32.totalorder %s1158_s6, 0 }
 0x21b   : > { %p1163_p10 = scmp.ge.s32.totalorder %s881_s21, 2  ;;  %s552_s11 = scalar_lea.sflag [#allocation4], %s551_s10 }
 0x21d   : > { %p739_p1 = pnand %p1163_p10, %p1162_p4 }
 0x21f   : > { %864 = dma.done.wait (!%p739_p1), %s552_s11, 128  }
 0x220   : > { %866 = vsyncadd (!%p739_p1), %s552_s11, 4294967168  ;;  %p18_p3 = scmp.ge.s32.totalorder %s947_s24, 4   ;;  %s1164_s18 = smov %s873_s19 }
 0x221   : > { %s1165_s19 = smov %s877_s20  ;;  %s1166_s20 = smov %s959_s27 }
 0x222   : > { %s1167_s21 = smov %s947_s24  ;;  %20 = sbr.rel (!%p18_p3) target bundleno = 5 (0x5), region = 85 }
 0x229   :  { %557 = vsyncpa [#allocation3], 1 }
 0x22a   :  { %559 = vsyncpa [#allocation3 + $0x1], 1 }
 0x22b   :  { %560 = vsyncpa [#allocation4], 1 }
 0x22c   :  { %562 = vsyncpa [#allocation4 + $0x1], 1 }

</bundles_post_ra>
